<compile_context>
chip_gen: v7x
topology: tpu7x:2x2x1
jax: 0.10.0
libtpu: 0.0.40
codegen_flags: <defaults>
</compile_context>

<pallas_src>
import jax
import jax.numpy as jnp
from jax.experimental import pallas as pl
from jax.experimental.pallas import tpu as pltpu


def _round_up(x, m):
    return (x + m - 1) // m * m


def unfold_nchw(x, k, padding, stride):
    """torch.nn.Unfold(k, 1, padding, stride): (N,C,H,W) -> (N, C, k*k, L),
    matching torch's memory order (channel slowest, kernel pos, then L)."""
    N, C, H, W = x.shape
    oH = (H + 2 * padding - k) // stride + 1
    oW = (W + 2 * padding - k) // stride + 1
    xp = jnp.pad(x, ((0, 0), (0, 0), (padding, padding), (padding, padding)))
    cols = []
    for di in range(k):
        for dj in range(k):
            sl = xp[:, :,
                    di:di + stride * (oH - 1) + 1:stride,
                    dj:dj + stride * (oW - 1) + 1:stride]
            cols.append(sl.reshape(N, C, oH * oW))
    return jnp.stack(cols, axis=2)            # (N, C, k*k, L)


def depenl_kernel(k_ref, q_ref, kc_ref, qc_ref, sel_ref, o1_ref, o2_ref):
    # k_ref/q_ref/o*_ref: (TR, TM) lane-dense flat tiles; kc/qc: (TR, TM//KK).
    # sel_ref: (TM//KK, TM) constant 0/1 matrix with sel[g, j] = (j // KK == g).
    sel = sel_ref[...]
    # Expand the per-group centre taps across the lane axis on the MXU.
    qc_full = jnp.dot(qc_ref[...], sel, preferred_element_type=jnp.float32)
    kc_full = jnp.dot(kc_ref[...], sel, preferred_element_type=jnp.float32)
    o1_ref[...] = (k_ref[...] * qc_full).astype(o1_ref.dtype)
    o2_ref[...] = (kc_full * q_ref[...]).astype(o2_ref.dtype)


def depenl_forward(key_map, query_map, k, padding, stride):
    N, C, H, W = key_map.shape
    KK = k * k
    CENTER = KK // 2

    ku = unfold_nchw(key_map, k, padding, stride)      # (N, C, KK, L)
    qu = unfold_nchw(query_map, k, padding, stride)
    L = ku.shape[-1]
    NC, M = N * C, KK * L

    # Flat per-(n, c) buffers -- identical memory to the torch .view() result.
    k_flat = ku.reshape(NC, M)
    q_flat = qu.reshape(NC, M)

    # Tiling: 1152 lanes (= 128 groups of KK) per column tile keeps every tile
    # aligned to both the 128-lane axis and the KK-element group structure.
    G = 128
    TM = KK * G
    TR = min(128, _round_up(NC, 8))
    Lp = _round_up(L, G)
    Mp = KK * Lp
    NCp = _round_up(NC, TR)
    if (NCp, Mp) != (NC, M):
        k_flat = jnp.pad(k_flat, ((0, NCp - NC), (0, Mp - M)))
        q_flat = jnp.pad(q_flat, ((0, NCp - NC), (0, Mp - M)))

    # Centre taps of the *viewed* tensors: flat positions a*KK + CENTER.
    kc = k_flat[:, CENTER::KK]                         # (NCp, Lp)
    qc = q_flat[:, CENTER::KK]

    # Constant 0/1 lane-expansion matrix (loaded into VMEM once).
    sel = (jnp.arange(TM)[None, :] // KK ==
           jnp.arange(G)[:, None]).astype(k_flat.dtype)

    big = lambda: pl.BlockSpec((TR, TM), lambda r, m: (r, m))
    small = lambda: pl.BlockSpec((TR, G), lambda r, m: (r, m))

    o1, o2 = pl.pallas_call(
        depenl_kernel,
        out_shape=(jax.ShapeDtypeStruct((NCp, Mp), key_map.dtype),
                   jax.ShapeDtypeStruct((NCp, Mp), key_map.dtype)),
        grid=(NCp // TR, Mp // TM),
        in_specs=[big(), big(), small(), small(),
                  pl.BlockSpec((G, TM), lambda r, m: (0, 0))],
        out_specs=(big(), big()),
        compiler_params=pltpu.CompilerParams(
            dimension_semantics=("parallel", "parallel"),
            vmem_limit_bytes=32 * 1024 * 1024),
    )(k_flat, q_flat, kc, qc, sel)

    out1 = o1[:NC, :M].reshape(N, C, L, KK)   # free reshapes back to the
    out2 = o2[:NC, :M].reshape(N, C, L, KK)   # torch output layout
    return out1, out2


def depenl_reference(key_map, query_map, k, padding, stride):
    """Pure-JAX replica of DepenL.forward (including the raw .view())."""
    N, C = key_map.shape[:2]
    KK = k * k
    ku = unfold_nchw(key_map, k, padding, stride)
    qu = unfold_nchw(query_map, k, padding, stride)
    kv = ku.reshape(N, C, -1, KK)
    qv = qu.reshape(N, C, -1, KK)
    c0 = KK // 2
    return kv * qv[:, :, :, c0:c0 + 1], kv[:, :, :, c0:c0 + 1] * qv


if __name__ == "__main__":
    k, padding, stride = 3, 1, 1
    N, C, H, W = 2, 4, 16, 16

    key = jax.random.PRNGKey(0)
    k1, k2 = jax.random.split(key)
    key_map = jax.random.normal(k1, (N, C, H, W), dtype=jnp.float32)
    query_map = jax.random.normal(k2, (N, C, H, W), dtype=jnp.float32)

    out1, out2 = depenl_forward(key_map, query_map, k, padding, stride)
    out1, out2 = jax.block_until_ready((out1, out2))

    ref1, ref2 = depenl_reference(key_map, query_map, k, padding, stride)
    KK = k * k
    oH = (H + 2 * padding - k) // stride + 1
    oW = (W + 2 * padding - k) // stride + 1
    L = oH * oW
    assert out1.shape == (N, C, L, KK), out1.shape
    assert out2.shape == (N, C, L, KK), out2.shape
    assert jnp.allclose(out1, ref1, rtol=5e-3, atol=1e-5), float(
        jnp.max(jnp.abs(out1 - ref1)))
    assert jnp.allclose(out2, ref2, rtol=5e-3, atol=1e-5), float(
        jnp.max(jnp.abs(out2 - ref2)))
    print("KERNEL_OK")
</pallas_src>

<mosaic_0001>
module attributes {stable_mosaic.version = 11 : i64} {
  func.func @depenl_kernel(%arg0: i32, %arg1: i32, %arg2: memref<8x1152xf32, #tpu.memory_space<vmem>>, %arg3: memref<8x1152xf32, #tpu.memory_space<vmem>>, %arg4: memref<8x128xf32, #tpu.memory_space<vmem>>, %arg5: memref<8x128xf32, #tpu.memory_space<vmem>>, %arg6: memref<128x1152xf32, #tpu.memory_space<vmem>>, %arg7: memref<8x1152xf32, #tpu.memory_space<vmem>>, %arg8: memref<8x1152xf32, #tpu.memory_space<vmem>>) attributes {dimension_semantics = [#tpu.dimension_semantics<parallel>, #tpu.dimension_semantics<parallel>], iteration_bounds = array<i64: 1, 2>, scalar_prefetch = 0 : i64, scratch_operands = 0 : i64, tpu.core_type = #tpu.core_type<tc>, window_params = [{transform_indices = @transform_0, window_bounds = array<i64: 8, 1152>}, {transform_indices = @transform_1, window_bounds = array<i64: 8, 1152>}, {transform_indices = @transform_2, window_bounds = array<i64: 8, 128>}, {transform_indices = @transform_3, window_bounds = array<i64: 8, 128>}, {pipeline_mode = #tpu.pipeline_mode<synchronous>, transform_indices = @transform_4, window_bounds = array<i64: 128, 1152>}, {transform_indices = @transform_5, window_bounds = array<i64: 8, 1152>}, {transform_indices = @transform_6, window_bounds = array<i64: 8, 1152>}]} {
    %c0 = arith.constant 0 : index
    %c0_0 = arith.constant 0 : index
    %0 = vector.load %arg6[%c0, %c0_0] : memref<128x1152xf32, #tpu.memory_space<vmem>>, vector<128x1152xf32>
    %c0_1 = arith.constant 0 : index
    %c0_2 = arith.constant 0 : index
    %1 = vector.load %arg5[%c0_1, %c0_2] : memref<8x128xf32, #tpu.memory_space<vmem>>, vector<8x128xf32>
    %cst = arith.constant dense<0.000000e+00> : vector<8x1152xf32>
    %2 = tpu.matmul %1, %0, %cst {dimension_numbers = #tpu.dot_dimension_numbers<[1], [0], [0], [1], [0, 0, 1, 1], [], []>} : vector<8x128xf32>, vector<128x1152xf32>, vector<8x1152xf32> -> vector<8x1152xf32>
    %c0_3 = arith.constant 0 : index
    %c0_4 = arith.constant 0 : index
    %3 = vector.load %arg4[%c0_3, %c0_4] : memref<8x128xf32, #tpu.memory_space<vmem>>, vector<8x128xf32>
    %cst_5 = arith.constant dense<0.000000e+00> : vector<8x1152xf32>
    %4 = tpu.matmul %3, %0, %cst_5 {dimension_numbers = #tpu.dot_dimension_numbers<[1], [0], [0], [1], [0, 0, 1, 1], [], []>} : vector<8x128xf32>, vector<128x1152xf32>, vector<8x1152xf32> -> vector<8x1152xf32>
    %c0_6 = arith.constant 0 : index
    %c0_7 = arith.constant 0 : index
    %5 = vector.load %arg2[%c0_6, %c0_7] : memref<8x1152xf32, #tpu.memory_space<vmem>>, vector<8x1152xf32>
    %6 = arith.mulf %5, %2 : vector<8x1152xf32>
    %c0_8 = arith.constant 0 : index
    %c0_9 = arith.constant 0 : index
    %7 = vector.load %arg7[%c0_8, %c0_9] : memref<8x1152xf32, #tpu.memory_space<vmem>>, vector<8x1152xf32>
    tpu.vector_store %arg7[%c0_8, %c0_9], %6 {strides = array<i32>} : memref<8x1152xf32, #tpu.memory_space<vmem>>, vector<8x1152xf32>,
    %c0_10 = arith.constant 0 : index
    %c0_11 = arith.constant 0 : index
    %8 = vector.load %arg3[%c0_10, %c0_11] : memref<8x1152xf32, #tpu.memory_space<vmem>>, vector<8x1152xf32>
    %9 = arith.mulf %4, %8 : vector<8x1152xf32>
    %c0_12 = arith.constant 0 : index
    %c0_13 = arith.constant 0 : index
    %10 = vector.load %arg8[%c0_12, %c0_13] : memref<8x1152xf32, #tpu.memory_space<vmem>>, vector<8x1152xf32>
    tpu.vector_store %arg8[%c0_12, %c0_13], %9 {strides = array<i32>} : memref<8x1152xf32, #tpu.memory_space<vmem>>, vector<8x1152xf32>,
    return
  }
  func.func @transform_0(%arg0: i32, %arg1: i32) -> (i32, i32) {
    %c0_i32 = arith.constant 0 : i32
    return %arg0, %arg1 : i32, i32
  }
  func.func @transform_1(%arg0: i32, %arg1: i32) -> (i32, i32) {
    %c0_i32 = arith.constant 0 : i32
    return %arg0, %arg1 : i32, i32
  }
  func.func @transform_2(%arg0: i32, %arg1: i32) -> (i32, i32) {
    %c0_i32 = arith.constant 0 : i32
    return %arg0, %arg1 : i32, i32
  }
  func.func @transform_3(%arg0: i32, %arg1: i32) -> (i32, i32) {
    %c0_i32 = arith.constant 0 : i32
    return %arg0, %arg1 : i32, i32
  }
  func.func @transform_4(%arg0: i32, %arg1: i32) -> (i32, i32) {
    %c0_i32 = arith.constant 0 : i32
    %c0_i32_0 = arith.constant 0 : i32
    %c0_i32_1 = arith.constant 0 : i32
    return %c0_i32, %c0_i32_0 : i32, i32
  }
  func.func @transform_5(%arg0: i32, %arg1: i32) -> (i32, i32) {
    %c0_i32 = arith.constant 0 : i32
    return %arg0, %arg1 : i32, i32
  }
  func.func @transform_6(%arg0: i32, %arg1: i32) -> (i32, i32) {
    %c0_i32 = arith.constant 0 : i32
    return %arg0, %arg1 : i32, i32
  }
}

</mosaic_0001>

<bundles_post_ra>
// kernel: tpu_custom_call.1
= control target key start
LH: loop header
LB: loop body
LE: loop exit
PB: predicated region body
PF: predicated region fallthrough
CT: control target
= control target key end

     0   :  { %s3167_s0 = inlined_call_operand.hbm [shape: f32[8,2304], index: 0, kind: input, shape index: {}]   ;;  %s3168_s1 = inlined_call_operand.hbm [shape: f32[8,2304], index: 1, kind: input, shape index: {}]   ;;  %s3169_s2 = inlined_call_operand.hbm [shape: f32[8,256], index: 2, kind: input, shape index: {}]   ;;  %s3170_s3 = inlined_call_operand.hbm [shape: f32[8,256], index: 3, kind: input, shape index: {}]   ;;  %s3171_s4 = inlined_call_operand.hbm [shape: f32[128,1152], index: 4, kind: input, shape index: {}]   ;;  %s3172_s5 = inlined_call_operand.hbm [shape: f32[8,2304], index: 5, kind: output, shape index: {0}]   ;;  %s3173_s6 = inlined_call_operand.hbm [shape: f32[8,2304], index: 6, kind: output, shape index: {1}]  }
   0x1   :  { %3199 = sst [smem:[#allocation35_spill]] %s3167_s0 }
   0x2   :  { %3200 = sst [smem:[#allocation36_spill]] %s3168_s1 }
   0x3   :  { %3201 = sst [smem:[#allocation37_spill]] %s3171_s4 }
   0x4   :  { %12 = vsyncpa [#allocation3], 0 }
   0x5   :  { %14 = vsyncpa [#allocation3 + $0x1], 0 }
   0x6   :  { %15 = vsyncpa [#allocation6], 0 }
   0x7   :  { %17 = vsyncpa [#allocation6 + $0x1], 0 }
   0x8   :  { %18 = vsyncpa [#allocation9], 0 }
   0x9   :  { %20 = vsyncpa [#allocation9 + $0x1], 0 }
   0xa   :  { %21 = vsyncpa [#allocation4], 0 }
   0xb   :  { %23 = vsyncpa [#allocation4 + $0x1], 0 }
   0xc   :  { %24 = vsyncpa [#allocation13], 0 }
   0xd   :  { %26 = vsyncpa [#allocation13 + $0x1], 0  ;;  %s2440_s21 = smov 0   ;;  %s2442_s22 = smov 0  }
   0xe   :  { %s2444_s23 = smov 0   ;;  %s2446_s24 = smov 0  }
   0xf   :  { %s2448_s25 = smov 0   ;;  %s2450_s26 = smov 0  }
  0x10 LB: > { %3202 = sst [smem:[#allocation20_spill]] %s2379_s23  ;;  %s2471_s27 = sadd.s32 4294967295, %s2391_s26   ;;  %s2391_s26 = sphi %s2450_s26, %s32_s26   ;;  %s2387_s25 = sphi %s2448_s25, %s3262_s25   ;;  %s2383_s24 = sphi %s2446_s24, %s3261_s24   ;;  %s2379_s23 = sphi %s2444_s23, %s3257_s23   ;;  %s2375_s22 = sphi %s2442_s22, %s3260_s22   ;;  %s2371_s21 = sphi %s2440_s21, %s3259_s21  }
  0x11   : > { %s1586_s28 = sadd.s32 4294967294, %s2391_s26   ;;  %p66_p0 = scmp.ne.s32.totalorder %s2375_s22, %s2371_s21 }
  0x12   : > { %p3174_p1 = scmp.eq.s32.totalorder %s2471_s27, 0  ;;  %p203_p3 = scmp.eq.s32.totalorder %s1586_s28, 1 }
  0x13   : > { %p1587_p5 = scmp.ge.s32.totalorder %s2391_s26, 1  ;;  %p238_p7 = scmp.lt.s32.totalorder %s2391_s26, 3 }
  0x14   : > { %p2480_p4 = por %p3174_p1, %p66_p0  ;;  %p2485_p6 = por %p203_p3, %p66_p0 }
  0x15   : > { %p2490_p8 = pnand %p1587_p5, %p238_p7  ;;  %s2393_s8 = smov [#allocation10]  }
  0x16   : > { %s3203_s29 = scalar_select %p2480_p4, 1, 0 }
  0x17   : > { %s3204_s30 = scalar_select %p2485_p6, 1, 0 }
  0x18   : > { %s3206_s7 = scalar_select %p2490_p8, 1, 0 }
  0x19   : > { %3205 = sst [smem:[#allocation21_spill]] %s3204_s30  ;;  %s250_s9 = sshll.u32 %s2393_s8, 4  ;;  %s251_s9 = int_to_ptr.vmem [resolvable:$true] %s250_s9 }
  0x1a   : > { %p2035_p9 = pneg %p2490_p8  ;;  %s41_s11 = sadd.s32 1, %s2387_s25 }
  0x1b   : > { %s3208_s4 = sld [smem:[#allocation37_spill]] }
  0x1c   : > { %p2499_p11 = pnand %p2035_p9, %p3174_p1 }
  0x1e   : > { %p2119_p13 = pneg %p2499_p11 }
  0x21   : > { %s2117_s14 = scalar_lea.hbm %s3208_s4, 18432 }
  0x22   : > { %p2118_p12 = scmp.ne.s32.totalorder %s3208_s4, %s2117_s14  ;;  %p2124_p5 = scmp.lt.u32.totalorder %s2117_s14, %s3208_s4 }
  0x24   : > { %p2120_p0 = pnand %p2119_p13, %p2118_p12 }
  0x26   : > { %p2121_p3 = pneg %p2120_p0 }
  0x28   : > { %p2126_p7 = pnand %p2124_p5, %p2121_p3 }
  0x2a   : > { %2129 = shalt.err (!%p2126_p7)
}
  0x2b   : > { %s2130_s19 = scalar_lea.vmem %s251_s9, 18432  ;;  %p2138_p2 = scmp.lt.s32.totalorder %s251_s9, %s251_s9 }
  0x2c   : > { %p2131_p9 = scmp.ne.s32.totalorder %s251_s9, %s2130_s19  ;;  %p2139_p6 = scmp.lt.s32.totalorder %s2130_s19, %s2130_s19 }
  0x2e   : > { %p2133_p10 = pnand %p2131_p9, %p2119_p13  ;;  %p2140_p4 = por %p2139_p6, %p2138_p2 }
  0x30   : > { %p2134_p1 = pneg %p2133_p10 }
  0x32   : > { %p2141_p8 = pnand %p2140_p4, %p2134_p1 }
  0x34   : > { %2144 = shalt.err (!%p2141_p8)
}
  0x35   : > { %s2394_s20 = smov 1152   ;;  %s2395_s28 = smov 72  }
  0x36   : > { %2038 = dma.hbm_to_vmem [thread:$0]  (!%p2499_p11), %s3208_s4, 18432, %s251_s9, [#allocation9], %s2394_s20, %s2394_s20, %s2395_s28  }
  0x37   : > { %p42_p1 = scmp.ge.s32.totalorder %s41_s11, 2  ;;  %s53_s13 = sadd.s32 1, %s2379_s23 }
  0x38   : > { %p60_p2 = scmp.ne.s32.totalorder %s2379_s23, %s2375_s22  ;;  %p61_p4 = scmp.eq.s32.totalorder %s2391_s26, 0 }
  0x39   : > { %s3264_s11 = smov (%p42_p1, %s41_s11), 0  ;;  %p3210_p8 = scmp.eq.s32.totalorder %s2471_s27, 1 }
  0x3a   : > { %3209 = sst [smem:[#allocation22_spill]] %s3264_s11  ;;  %p62_p6 = por %p61_p4, %p60_p2 }
  0x3b   : > { %p2528_p10 = por %p3210_p8, %p60_p2  ;;  %s49_s10 = ssub.s32 %s2387_s25, %s3264_s11 }
  0x3c   : > { %p2060_p12 = scmp.lt.s32.totalorder %s2391_s26, 2  ;;  %p51_p13 = scmp.eq.s32.totalorder %s49_s10, 0 }
  0x3d   : > { %s3211_s14 = scalar_select %p2528_p10, 1, 0 }
  0x3e   : > { %s2536_s9 = sand.u32 1, %s2379_s23   ;;  %p2539_p11 = pnand %p2060_p12, %p62_p6 }
  0x3f   : > { %s3178_s15 = smul.u32 72, %s2536_s9  ;;  %s3180_s19 = sand.u32 1, %s2391_s26  }
  0x40   : > { %s3212_s16 = scalar_select %p2539_p11, 1, 0 }
  0x41   : > { %s2544_s17 = scalar_select %p51_p13, %s2379_s23, %s53_s13  }
  0x42   : > { %s3179_s18 = smul.u32 1152, %s2387_s25  ;;  %s3214_s1 = sld [smem:[#allocation36_spill]] }
  0x43   : > { %3213 = sst [smem:[#allocation23_spill]] %s2544_s17  ;;  %s289_s12 = scalar_lea.vmem [#allocation5], %s3178_s15 }
  0x44   : > { %s299_s10 = sshll.u32 %s289_s12, 4  ;;  %s2561_s13 = scalar_lea.sflag [#allocation6], %s3180_s19  ;;  %s2557_s10 = int_to_ptr.vmem [resolvable:$true] %s299_s10 }
  0x45   : > { %p2567_p3 = pneg %p2539_p11 }
  0x48   : > { %s2553_s8 = scalar_lea.hbm %s3214_s1, %s3179_s18  ;;  %s2150_s12 = scalar_lea.hbm %s3214_s1, 2304 }
  0x49   : > { %s2145_s4 = scalar_lea.hbm %s2553_s8, 1152  ;;  %p2151_p9 = scmp.lt.u32.totalorder %s2553_s8, %s3214_s1 }
  0x4a   : > { %p2146_p0 = scmp.ne.s32.totalorder %s2553_s8, %s2145_s4  ;;  %p2152_p1 = scmp.lt.u32.totalorder %s2150_s12, %s2145_s4 }
  0x4b   : > { %p2154_p4 = scmp.lt.u32.totalorder %s2145_s4, %s2553_s8 }
  0x4c   : > { %p2148_p5 = pnand %p2567_p3, %p2146_p0  ;;  %p2153_p2 = por %p2152_p1, %p2151_p9 }
  0x4e   : > { %p2149_p7 = pneg %p2148_p5  ;;  %p2155_p6 = por %p2154_p4, %p2153_p2 }
  0x50   : > { %p2156_p8 = pnand %p2155_p6, %p2149_p7 }
  0x52   : > { %2159 = shalt.err (!%p2156_p8)
}
  0x53   : > { %s2160_s19 = scalar_lea.vmem %s2557_s10, 1152  ;;  %s2396_s20 = smov [#allocation5]  }
  0x54   : > { %p2161_p12 = scmp.ne.s32.totalorder %s2557_s10, %s2160_s19  ;;  %s2165_s28 = sshll.u32 %s2396_s20, 4  ;;  %s2166_s28 = int_to_ptr.vmem [resolvable:$false] %s2165_s28 }
  0x55   : > { %s2167_s15 = scalar_lea.vmem %s2166_s28, 2304  ;;  %p2168_p5 = scmp.lt.s32.totalorder %s2557_s10, %s2166_s28 }
  0x56   : > { %p2163_p13 = pnand %p2161_p12, %p2567_p3  ;;  %p2169_p10 = scmp.lt.s32.totalorder %s2167_s15, %s2160_s19 }
  0x58   : > { %p2164_p0 = pneg %p2163_p13  ;;  %p2170_p9 = por %p2169_p10, %p2168_p5 }
  0x5a   : > { %p2171_p1 = pnand %p2170_p9, %p2164_p0 }
  0x5c   : > { %2174 = shalt.err (!%p2171_p1)
}
  0x5d   : > { %2045 = dma.hbm_to_vmem [thread:$0]  (!%p2539_p11), %s2553_s8, 1152, %s2557_s10, %s2561_s13  }
  0x5e   : > { %s3216_s4 = smul.u32 1152, %s2387_s25  ;;  %s3217_s0 = sld [smem:[#allocation35_spill]] }
  0x5f   : > { %s3218_s19 = smul.u32 72, %s2536_s9  ;;  %s265_s17 = scalar_lea.sflag [#allocation3], %s2536_s9 }
  0x61   : > { %s268_s28 = scalar_lea.vmem [#allocation2], %s3218_s19 }
  0x62   : > { %s278_s15 = sshll.u32 %s268_s28, 4  ;;  %s279_s15 = int_to_ptr.vmem [resolvable:$true] %s278_s15 }
  0x64   : > { %s2596_s20 = scalar_lea.hbm %s3217_s0, %s3216_s4  ;;  %s2180_s4 = scalar_lea.hbm %s3217_s0, 2304 }
  0x65   : > { %s2175_s23 = scalar_lea.hbm %s2596_s20, 1152  ;;  %p2181_p4 = scmp.lt.u32.totalorder %s2596_s20, %s3217_s0 }
  0x66   : > { %p2176_p10 = scmp.ne.s32.totalorder %s2596_s20, %s2175_s23  ;;  %p2182_p6 = scmp.lt.u32.totalorder %s2180_s4, %s2175_s23 }
  0x67   : > { %p2184_p12 = scmp.lt.u32.totalorder %s2175_s23, %s2596_s20 }
  0x68   : > { %p2178_p7 = pnand %p2176_p10, %p2567_p3  ;;  %p2183_p8 = por %p2182_p6, %p2181_p4 }
  0x6a   : > { %p2179_p2 = pneg %p2178_p7  ;;  %p2185_p13 = por %p2184_p12, %p2183_p8 }
  0x6c   : > { %p2186_p0 = pnand %p2185_p13, %p2179_p2 }
  0x6e   : > { %2189 = shalt.err (!%p2186_p0)
}
  0x6f   : > { %s2190_s19 = scalar_lea.vmem %s279_s15, 1152  ;;  %s2397_s28 = smov [#allocation2]  }
  0x70   : > { %p2191_p5 = scmp.ne.s32.totalorder %s279_s15, %s2190_s19  ;;  %s2195_s1 = sshll.u32 %s2397_s28, 4  ;;  %s2196_s1 = int_to_ptr.vmem [resolvable:$false] %s2195_s1 }
  0x71   : > { %s2197_s8 = scalar_lea.vmem %s2196_s1, 2304  ;;  %p2198_p10 = scmp.lt.s32.totalorder %s279_s15, %s2196_s1 }
  0x72   : > { %p2193_p9 = pnand %p2191_p5, %p2567_p3  ;;  %p2199_p7 = scmp.lt.s32.totalorder %s2197_s8, %s2190_s19 }
  0x74   : > { %p2194_p1 = pneg %p2193_p9  ;;  %p2200_p11 = por %p2199_p7, %p2198_p10 }
  0x76   : > { %p2201_p4 = pnand %p2200_p11, %p2194_p1 }
  0x78   : > { %2204 = shalt.err (!%p2201_p4)
}
  0x79   : > { %p3219_p6 = scmp.ne.s32.totalorder %s3212_s16, 0  ;;  %s1593_s23 = sshll.u32 %s2387_s25, 7 }
  0x7a   : > { %s3220_s10 = sshll.u32 %s2536_s9, 3  ;;  %s317_s1 = scalar_lea.hbm %s3169_s2, %s1593_s23 }
  0x7b   : > { %2042 = dma.hbm_to_vmem [thread:$0]  (!%p3219_p6), %s2596_s20, 1152, %s279_s15, %s265_s17  }
  0x7c   : > { %s310_s4 = scalar_lea.vmem [#allocation7], %s3220_s10  ;;  %s2205_s19 = scalar_lea.hbm %s317_s1, 128 }
  0x7d   : > { %s319_s18 = sshll.u32 %s310_s4, 4  ;;  %p2206_p11 = scmp.ne.s32.totalorder %s317_s1, %s2205_s19  ;;  %s320_s18 = int_to_ptr.vmem [resolvable:$true] %s319_s18 }
  0x7e   : > { %s2210_s30 = scalar_lea.hbm %s3169_s2, 256  ;;  %p2211_p12 = scmp.lt.u32.totalorder %s317_s1, %s3169_s2 }
  0x7f   : > { %p2208_p2 = pnand %p2206_p11, %p2567_p3  ;;  %p2212_p13 = scmp.lt.u32.totalorder %s2210_s30, %s2205_s19 }
  0x80   : > { %p2214_p5 = scmp.lt.u32.totalorder %s2205_s19, %s317_s1 }
  0x81   : > { %p2209_p8 = pneg %p2208_p2  ;;  %p2213_p0 = por %p2212_p13, %p2211_p12 }
  0x83   : > { %p2215_p9 = por %p2214_p5, %p2213_p0 }
  0x85   : > { %p2216_p1 = pnand %p2215_p9, %p2209_p8 }
  0x87   : > { %2219 = shalt.err (!%p2216_p1)
}
  0x88   : > { %s2220_s15 = scalar_lea.vmem %s320_s18, 128  ;;  %s2398_s10 = smov [#allocation7]  }
  0x89   : > { %p2221_p10 = scmp.ne.s32.totalorder %s320_s18, %s2220_s15  ;;  %s2225_s4 = sshll.u32 %s2398_s10, 4  ;;  %s2226_s4 = int_to_ptr.vmem [resolvable:$false] %s2225_s4 }
  0x8a   : > { %s2227_s0 = scalar_lea.vmem %s2226_s4, 256  ;;  %p2228_p11 = scmp.lt.s32.totalorder %s320_s18, %s2226_s4 }
  0x8b   : > { %p2223_p7 = pnand %p2221_p10, %p2567_p3  ;;  %p2229_p2 = scmp.lt.s32.totalorder %s2227_s0, %s2220_s15 }
  0x8d   : > { %p2224_p4 = pneg %p2223_p7  ;;  %p2230_p6 = por %p2229_p2, %p2228_p11 }
  0x8f   : > { %p2231_p12 = pnand %p2230_p6, %p2224_p4 }
  0x91   : > { %2234 = shalt.err (!%p2231_p12)
}
  0x92   : > { %p3221_p13 = scmp.ne.s32.totalorder %s3212_s16, 0  ;;  %s2645_s28 = scalar_lea.hbm %s3170_s3, %s1593_s23 }
  0x93   : > { %s3222_s19 = sshll.u32 %s2536_s9, 3  ;;  %s3223_s20 = sand.u32 1, %s2391_s26  }
  0x94   : > { %2048 = dma.hbm_to_vmem [thread:$0]  (!%p3221_p13), %s317_s1, 128, %s320_s18, %s2561_s13  }
  0x95   : > { %s330_s8 = scalar_lea.vmem [#allocation8], %s3222_s19  ;;  %s327_s15 = scalar_lea.sflag [#allocation9], %s3223_s20 }
  0x96   : > { %s339_s17 = sshll.u32 %s330_s8, 4  ;;  %s2235_s10 = scalar_lea.hbm %s2645_s28, 128  ;;  %s340_s17 = int_to_ptr.vmem [resolvable:$true] %s339_s17 }
  0x97   : > { %p2236_p6 = scmp.ne.s32.totalorder %s2645_s28, %s2235_s10  ;;  %s2240_s23 = scalar_lea.hbm %s3170_s3, 256 }
  0x98   : > { %p2241_p5 = scmp.lt.u32.totalorder %s2645_s28, %s3170_s3  ;;  %p2242_p9 = scmp.lt.u32.totalorder %s2240_s23, %s2235_s10 }
  0x99   : > { %p2238_p8 = pnand %p2236_p6, %p2567_p3  ;;  %p2244_p10 = scmp.lt.u32.totalorder %s2235_s10, %s2645_s28 }
  0x9a   : > { %p2243_p1 = por %p2242_p9, %p2241_p5 }
  0x9b   : > { %p2239_p0 = pneg %p2238_p8 }
  0x9c   : > { %p2245_p7 = por %p2244_p10, %p2243_p1 }
  0x9e   : > { %p2246_p4 = pnand %p2245_p7, %p2239_p0 }
  0xa0   : > { %2249 = shalt.err (!%p2246_p4)
}
  0xa1   : > { %s2250_s4 = scalar_lea.vmem %s340_s17, 128  ;;  %s2399_s0 = smov [#allocation8]  }
  0xa2   : > { %p2251_p11 = scmp.ne.s32.totalorder %s340_s17, %s2250_s4  ;;  %s2255_s30 = sshll.u32 %s2399_s0, 4  ;;  %s2256_s30 = int_to_ptr.vmem [resolvable:$false] %s2255_s30 }
  0xa3   : > { %s2257_s12 = scalar_lea.vmem %s2256_s30, 256  ;;  %p2258_p6 = scmp.lt.s32.totalorder %s340_s17, %s2256_s30 }
  0xa4   : > { %p2253_p2 = pnand %p2251_p11, %p2567_p3  ;;  %p2259_p8 = scmp.lt.s32.totalorder %s2257_s12, %s2250_s4 }
  0xa6   : > { %p2254_p12 = pneg %p2253_p2  ;;  %p2260_p13 = por %p2259_p8, %p2258_p6 }
  0xa8   : > { %p2261_p5 = pnand %p2260_p13, %p2254_p12 }
  0xaa   : > { %2264 = shalt.err (!%p2261_p5)
}
  0xab   : > { %p3224_p9 = scmp.ne.s32.totalorder %s3212_s16, 0  ;;  %p3225_p0 = scmp.ne.s32.totalorder %s3206_s7, 0 }
  0xad   : > { %2051 = dma.hbm_to_vmem [thread:$0]  (!%p3224_p9), %s2645_s28, 128, %s340_s17, %s327_s15  }
  0xae   : > { %348 = sbr.rel (%p3225_p0) target bundleno = 588 (0x24c), region = 40 }
  0xb5   : > { %s2671_s11 = sand.u32 1, %s2375_s22   ;;  %p3226_p3 = scmp.ne.s32.totalorder %s3203_s29, 0 }
  0xb6   : > { %s2674_s19 = smul.u32 72, %s2671_s11  ;;  %s351_s8 = scalar_lea.sflag [#allocation3], %s2671_s11 }
  0xb8   : > { %s2678_s20 = scalar_lea.vmem [#allocation2], %s2674_s19 }
  0xb9   : > { %2346 = dma.done.wait (%p3226_p3), %s351_s8, 1152  }
  0xba   : > { %2348 = vsyncadd (%p3226_p3), %s351_s8, 4294966144  ;;  %s359_s7 = sand.u32 1, %s2471_s27   ;;  %s2686_s28 = scalar_lea.vmem [#allocation5], %s2674_s19 }
  0xbb   : > { %s360_s16 = scalar_lea.sflag [#allocation6], %s359_s7 }
  0xbc   : > { %2350 = dma.done.wait (%p3226_p3), %s360_s16, 1280  }
  0xbd   : > { %2352 = vsyncadd (%p3226_p3), %s360_s16, 4294966016  ;;  %s1597_s17 = sshll.u32 %s2671_s11, 3  ;;  %s378_s10 = scalar_lea.sflag [#allocation9], %s359_s7 }
  0xbe   : > { %s2693_s15 = scalar_lea.vmem [#allocation7], %s1597_s17  ;;  %s2695_s13 = scalar_lea.vmem [#allocation8], %s1597_s17 }
  0xbf   : > { %2354 = dma.done.wait (%p3226_p3), %s378_s10, 128  }
  0xc0   : > { %2356 = vsyncadd (%p3226_p3), %s378_s10, 4294967168  ;;  %p3227_p13 = scmp.eq.s32.totalorder %s2471_s27, 0 }
  0xc2   : > { %2358 = dma.done.wait (%p3227_p13), [#allocation9], 18432   ;;  %p3228_p1 = pmov %p3227_p13 }
  0xc3   : > { %v3186_v0 = vmov 0.0   ;;  %v439_v1 = vld [vmem:[#allocation10 + $0x8] sm:$0xff]  ;;  %v448_v2 = vld [vmem:[#allocation10 + $0x50] sm:$0xff]  ;;  %v441_v3 = vld [vmem:[#allocation10 + $0x18] sm:$0xff]  ;;  %vm2402_vm0 = vmmov 0   ;;  %s3042_s27 = scalar_lea.vmem [#allocation11], %s2674_s19 }
  0xc4   : > { %2360 = vsyncadd (%p3228_p1), [#allocation9], 4294948864  ;;  %647 = vmatprep.mubr.f32.mxu0 %v3186_v0  ;;  %718 = vmatprep.mubr.f32.mxu1 %v3186_v0  ;;  %v2707_v4 = vpack.c.bf16 %v448_v2, %v439_v1  ;;  %v450_v5 = vld [vmem:[#allocation10 + $0x60] sm:$0xff]  ;;  %v447_v7 = vld [vmem:[#allocation10 + $0x48] sm:$0xff]  ;;  %s1606_s29 = smul.u32 1152, %s2383_s24  ;;  %s1368_s18 = sshll.u32 %s3042_s27, 4  ;;  %s3068_s18 = int_to_ptr.vmem [resolvable:$true] %s1368_s18 }
  0xc5   : > { %v438_v6 = vld [vmem:[#allocation10] sm:$0xff]  ;;  %v2709_v8 = vpack.c.bf16 %v450_v5, %v441_v3  ;;  %v440_v10 = vld [vmem:[#allocation10 + $0x10] sm:$0xff]  ;;  %v449_v11 = vld [vmem:[#allocation10 + $0x58] sm:$0xff]  ;;  %s3072_s4 = scalar_lea.vmem [#allocation12], %s2674_s19  ;;  %s1347_s0 = scalar_lea.sflag [#allocation4], %s2671_s11 }
  0xc6   : > { %v2711_v9 = vpack.c.bf16 %v447_v7, %v438_v6  ;;  %v457_v12 = vld [vmem:[#allocation10 + $0x98] sm:$0xff]  ;;  %1713 = vmatprep.subr.bf16.mxu0 %v2707_v4  ;;  %v2714_v13 = vpack.c.bf16 %v449_v11, %v440_v10  ;;  %v466_v14 = vld [vmem:[#allocation10 + $0xe0] sm:$0xff]  ;;  %v459_v15 = vld [vmem:[#allocation10 + $0xa8] sm:$0xff]  ;;  %s3066_s9 = scalar_lea.hbm %s3172_s5, %s1606_s29  ;;  %s2265_s30 = scalar_lea.vmem %s3068_s18, 1152 }
  0xc7   : > { %v468_v16 = vld [vmem:[#allocation10 + $0xf0] sm:$0xff]  ;;  %1745 = vmatprep.subr.bf16.mxu1 %v2709_v8  ;;  %v2718_v17 = vpack.c.bf16 %v466_v14, %v457_v12  ;;  %v465_v20 = vld [vmem:[#allocation10 + $0xd8] sm:$0xff]  ;;  %v458_v21 = vld [vmem:[#allocation10 + $0xa0] sm:$0xff]  ;;  %p2266_p10 = scmp.ne.s32.totalorder %s3068_s18, %s2265_s30  ;;  %p3252_p7 = scmp.ne.s32.totalorder %s3211_s14, 0 }
  0xc8   : > { %1715 = vmatpush1.bf16.msra.mxu0 %v2711_v9  ;;  %v2720_v18 = vpack.c.bf16 %v468_v16, %v459_v15  ;;  %v456_v19 = vld [vmem:[#allocation10 + $0x90] sm:$0xff]  ;;  %1747 = vmatpush1.bf16.msra.mxu1 %v2714_v13  ;;  %v467_v23 = vld [vmem:[#allocation10 + $0xe8] sm:$0xff]  ;;  %v477_v28 = vld [vmem:[#allocation10 + $0x138] sm:$0xff]  ;;  %s2403_s12 = smov [#allocation11]  }
  0xc9   : > { %v2723_v22 = vpack.c.bf16 %v465_v20, %v456_v19  ;;  %v475_v24 = vld [vmem:[#allocation10 + $0x128] sm:$0xff]  ;;  %v484_v25 = vld [vmem:[#allocation10 + $0x170] sm:$0xff]  ;;  %1717 = vmatprep.subr.bf16.mxu0 %v2718_v17  ;;  %v2727_v26 = vpack.c.bf16 %v467_v23, %v458_v21  ;;  %v486_v29 = vld [vmem:[#allocation10 + $0x180] sm:$0xff]  ;;  %p2267_p4 = pnand %p2266_p10, %p3252_p7  ;;  %s2269_s8 = sshll.u32 %s2403_s12, 4  ;;  %s2270_s8 = int_to_ptr.vmem [resolvable:$false] %s2269_s8 }
  0xca   : > { %1749 = vmatprep.subr.bf16.mxu1 %v2720_v18  ;;  %v2729_v27 = vpack.c.bf16 %v484_v25, %v475_v24  ;;  %v474_v30 = vld [vmem:[#allocation10 + $0x120] sm:$0xff]  ;;  %v2731_v31 = vpack.c.bf16 %v486_v29, %v477_v28  ;;  %v483_v32 = vld [vmem:[#allocation10 + $0x168] sm:$0xff]  ;;  %v476_v33 = vld [vmem:[#allocation10 + $0x130] sm:$0xff]  ;;  %p2272_p2 = scmp.lt.s32.totalorder %s3068_s18, %s2270_s8 }
  0xcb   : > { %v485_v34 = vld [vmem:[#allocation10 + $0x178] sm:$0xff]  ;;  %v2734_v35 = vpack.c.bf16 %v483_v32, %v474_v30  ;;  %v502_v37 = vld [vmem:[#allocation10 + $0x200] sm:$0xff]  ;;  %v495_v38 = vld [vmem:[#allocation10 + $0x1c8] sm:$0xff]  ;;  %p2268_p11 = pneg %p2267_p4 }
  0xcc   : > { %1719 = vmatpush1.bf16.msra.mxu0 %v2723_v22  ;;  %v493_v36 = vld [vmem:[#allocation10 + $0x1b8] sm:$0xff]  ;;  %1751 = vmatpush1.bf16.msra.mxu1 %v2727_v26  ;;  %v2738_v39 = vpack.c.bf16 %v485_v34, %v476_v33  ;;  %v504_v41 = vld [vmem:[#allocation10 + $0x210] sm:$0xff]  ;;  %v494_v45 = vld [vmem:[#allocation10 + $0x1c0] sm:$0xff] }
  0xcd   : > { %1721 = vmatprep.subr.bf16.mxu0 %v2729_v27  ;;  %v2740_v40 = vpack.c.bf16 %v502_v37, %v493_v36  ;;  %v492_v42 = vld [vmem:[#allocation10 + $0x1b0] sm:$0xff]  ;;  %v501_v43 = vld [vmem:[#allocation10 + $0x1f8] sm:$0xff]  ;;  %1753 = vmatprep.subr.bf16.mxu1 %v2731_v31  ;;  %v2743_v44 = vpack.c.bf16 %v504_v41, %v495_v38  ;;  %v503_v46 = vld [vmem:[#allocation10 + $0x208] sm:$0xff] }
  0xce   : > { %v511_v47 = vld [vmem:[#allocation10 + $0x248] sm:$0xff]  ;;  %v520_v48 = vld [vmem:[#allocation10 + $0x290] sm:$0xff]  ;;  %v513_v49 = vld [vmem:[#allocation10 + $0x258] sm:$0xff]  ;;  %v2746_v51 = vpack.c.bf16 %v501_v43, %v492_v42  ;;  %v2750_v52 = vpack.c.bf16 %v503_v46, %v494_v45 }
  0xcf   : > { %v522_v50 = vld [vmem:[#allocation10 + $0x2a0] sm:$0xff]  ;;  %v2752_v53 = vpack.c.bf16 %v520_v48, %v511_v47  ;;  %v519_v55 = vld [vmem:[#allocation10 + $0x288] sm:$0xff]  ;;  %v512_v56 = vld [vmem:[#allocation10 + $0x250] sm:$0xff] }
  0xd0   : > { %1723 = vmatpush1.bf16.msra.mxu0 %v2734_v35  ;;  %1755 = vmatpush1.bf16.msra.mxu1 %v2738_v39  ;;  %v510_v54 = vld [vmem:[#allocation10 + $0x240] sm:$0xff]  ;;  %v2755_v57 = vpack.c.bf16 %v522_v50, %v513_v49  ;;  %v521_v58 = vld [vmem:[#allocation10 + $0x298] sm:$0xff]  ;;  %v531_v61 = vld [vmem:[#allocation10 + $0x2e8] sm:$0xff] }
  0xd1   : > { %1725 = vmatprep.subr.bf16.mxu0 %v2740_v40  ;;  %1757 = vmatprep.subr.bf16.mxu1 %v2743_v44  ;;  %v529_v59 = vld [vmem:[#allocation10 + $0x2d8] sm:$0xff]  ;;  %v538_v60 = vld [vmem:[#allocation10 + $0x320] sm:$0xff]  ;;  %v540_v62 = vld [vmem:[#allocation10 + $0x330] sm:$0xff]  ;;  %v2758_v63 = vpack.c.bf16 %v519_v55, %v510_v54  ;;  %v2762_v1 = vpack.c.bf16 %v521_v58, %v512_v56 }
  0xd2   : > { %v2764_v2 = vpack.c.bf16 %v538_v60, %v529_v59  ;;  %v528_v3 = vld [vmem:[#allocation10 + $0x2d0] sm:$0xff]  ;;  %v537_v5 = vld [vmem:[#allocation10 + $0x318] sm:$0xff]  ;;  %v530_v6 = vld [vmem:[#allocation10 + $0x2e0] sm:$0xff]  ;;  %v2767_v7 = vpack.c.bf16 %v540_v62, %v531_v61 }
  0xd3   : > { %v539_v10 = vld [vmem:[#allocation10 + $0x328] sm:$0xff]  ;;  %v556_v12 = vld [vmem:[#allocation10 + $0x3b0] sm:$0xff]  ;;  %v549_v14 = vld [vmem:[#allocation10 + $0x378] sm:$0xff]  ;;  %v2770_v16 = vpack.c.bf16 %v537_v5, %v528_v3 }
  0xd4   : > { %1727 = vmatpush1.bf16.msra.mxu0 %v2746_v51  ;;  %1759 = vmatpush1.bf16.msra.mxu1 %v2750_v52  ;;  %v547_v11 = vld [vmem:[#allocation10 + $0x368] sm:$0xff]  ;;  %v558_v15 = vld [vmem:[#allocation10 + $0x3c0] sm:$0xff]  ;;  %v2774_v19 = vpack.c.bf16 %v539_v10, %v530_v6  ;;  %v548_v24 = vld [vmem:[#allocation10 + $0x370] sm:$0xff] }
  0xd5   : > { %1729 = vmatprep.subr.bf16.mxu0 %v2752_v53  ;;  %1761 = vmatprep.subr.bf16.mxu1 %v2755_v57  ;;  %v2776_v20 = vpack.c.bf16 %v556_v12, %v547_v11  ;;  %v546_v21 = vld [vmem:[#allocation10 + $0x360] sm:$0xff]  ;;  %v555_v23 = vld [vmem:[#allocation10 + $0x3a8] sm:$0xff]  ;;  %v2779_v25 = vpack.c.bf16 %v558_v15, %v549_v14  ;;  %v557_v28 = vld [vmem:[#allocation10 + $0x3b8] sm:$0xff] }
  0xd6   : > { %v565_v29 = vld [vmem:[#allocation10 + $0x3f8] sm:$0xff]  ;;  %v574_v30 = vld [vmem:[#allocation10 + $0x440] sm:$0xff]  ;;  %v567_v32 = vld [vmem:[#allocation10 + $0x408] sm:$0xff]  ;;  %v2782_v34 = vpack.c.bf16 %v555_v23, %v546_v21  ;;  %v2786_v36 = vpack.c.bf16 %v557_v28, %v548_v24 }
  0xd7   : > { %v576_v33 = vld [vmem:[#allocation10 + $0x450] sm:$0xff]  ;;  %v2788_v37 = vpack.c.bf16 %v574_v30, %v565_v29  ;;  %v573_v41 = vld [vmem:[#allocation10 + $0x438] sm:$0xff]  ;;  %v566_v42 = vld [vmem:[#allocation10 + $0x400] sm:$0xff] }
  0xd8   : > { %1731 = vmatpush1.bf16.msra.mxu0 %v2758_v63  ;;  %1763 = vmatpush1.bf16.msra.mxu1 %v2762_v1  ;;  %v564_v38 = vld [vmem:[#allocation10 + $0x3f0] sm:$0xff]  ;;  %v2791_v43 = vpack.c.bf16 %v576_v33, %v567_v32  ;;  %v575_v45 = vld [vmem:[#allocation10 + $0x448] sm:$0xff]  ;;  %v445_v48 = vld [vmem:[#allocation10 + $0x38] sm:$0xff] }
  0xd9   : > { %1733 = vmatprep.subr.bf16.mxu0 %v2764_v2  ;;  %1765 = vmatprep.subr.bf16.mxu1 %v2767_v7  ;;  %v443_v46 = vld [vmem:[#allocation10 + $0x28] sm:$0xff]  ;;  %v452_v47 = vld [vmem:[#allocation10 + $0x70] sm:$0xff]  ;;  %v454_v49 = vld [vmem:[#allocation10 + $0x80] sm:$0xff]  ;;  %v2794_v50 = vpack.c.bf16 %v573_v41, %v564_v38  ;;  %v2798_v54 = vpack.c.bf16 %v575_v45, %v566_v42 }
  0xda   : > { %v2800_v55 = vpack.c.bf16 %v452_v47, %v443_v46  ;;  %v442_v56 = vld [vmem:[#allocation10 + $0x20] sm:$0xff]  ;;  %v451_v58 = vld [vmem:[#allocation10 + $0x68] sm:$0xff]  ;;  %v444_v59 = vld [vmem:[#allocation10 + $0x30] sm:$0xff]  ;;  %v2803_v60 = vpack.c.bf16 %v454_v49, %v445_v48 }
  0xdb   : > { %v453_v61 = vld [vmem:[#allocation10 + $0x78] sm:$0xff]  ;;  %v470_v3 = vld [vmem:[#allocation10 + $0x100] sm:$0xff]  ;;  %v463_v5 = vld [vmem:[#allocation10 + $0xc8] sm:$0xff]  ;;  %v2809_v11 = vpack.c.bf16 %v451_v58, %v442_v56 }
  0xdc   : > { %1735 = vmatpush1.bf16.msra.mxu0 %v2770_v16  ;;  %1767 = vmatpush1.bf16.msra.mxu1 %v2774_v19  ;;  %3229 = vst [vmem:[#allocation24_spill] sm:$0xff] %v2803_v60  ;;  %v461_v62 = vld [vmem:[#allocation10 + $0xb8] sm:$0xff]  ;;  %v472_v6 = vld [vmem:[#allocation10 + $0x110] sm:$0xff]  ;;  %v2813_v12 = vpack.c.bf16 %v453_v61, %v444_v59  ;;  %v462_v23 = vld [vmem:[#allocation10 + $0xc0] sm:$0xff] }
  0xdd   : > { %1737 = vmatprep.subr.bf16.mxu0 %v2776_v20  ;;  %1769 = vmatprep.subr.bf16.mxu1 %v2779_v25  ;;  %v2807_v10 = vld [vmem:[%s2695_s13] sm:$0xff]  ;;  %v2815_v14 = vpack.c.bf16 %v470_v3, %v461_v62  ;;  %v2818_v24 = vpack.c.bf16 %v472_v6, %v463_v5  ;;  %v471_v28 = vld [vmem:[#allocation10 + $0x108] sm:$0xff]  ;;  %v490_v33 = vld [vmem:[#allocation10 + $0x1a0] sm:$0xff] }
  0xde   : > { %3230 = vst [vmem:[#allocation25_spill] sm:$0xff] %v2813_v12  ;;  %v460_v15 = vld [vmem:[#allocation10 + $0xb0] sm:$0xff]  ;;  %v469_v21 = vld [vmem:[#allocation10 + $0xf8] sm:$0xff]  ;;  %v479_v29 = vld [vmem:[#allocation10 + $0x148] sm:$0xff]  ;;  %v2827_v41 = vpack.c.bf16 %v471_v28, %v462_v23 }
  0xdf   : > { %3231 = vst [vmem:[#allocation26_spill] sm:$0xff] %v2818_v24  ;;  %v488_v30 = vld [vmem:[#allocation10 + $0x190] sm:$0xff]  ;;  %v481_v32 = vld [vmem:[#allocation10 + $0x158] sm:$0xff]  ;;  %v2823_v38 = vpack.c.bf16 %v469_v21, %v460_v15  ;;  %v478_v45 = vld [vmem:[#allocation10 + $0x140] sm:$0xff] }
  0xe0   : > { %1739 = vmatpush1.bf16.msra.mxu0 %v2782_v34  ;;  %1771 = vmatpush1.bf16.msra.mxu1 %v2786_v36  ;;  %3232 = vst [vmem:[#allocation27_spill] sm:$0xff] %v2827_v41  ;;  %v2829_v42 = vpack.c.bf16 %v488_v30, %v479_v29  ;;  %v487_v46 = vld [vmem:[#allocation10 + $0x188] sm:$0xff]  ;;  %v480_v47 = vld [vmem:[#allocation10 + $0x150] sm:$0xff]  ;;  %v2832_v48 = vpack.c.bf16 %v490_v33, %v481_v32  ;;  %v489_v49 = vld [vmem:[#allocation10 + $0x198] sm:$0xff] }
  0xe1   : > { %1741 = vmatprep.subr.bf16.mxu0 %v2788_v37  ;;  %1773 = vmatprep.subr.bf16.mxu1 %v2791_v43  ;;  %v497_v56 = vld [vmem:[#allocation10 + $0x1d8] sm:$0xff]  ;;  %v506_v58 = vld [vmem:[#allocation10 + $0x220] sm:$0xff]  ;;  %v499_v59 = vld [vmem:[#allocation10 + $0x1e8] sm:$0xff]  ;;  %v2837_v62 = vpack.c.bf16 %v487_v46, %v478_v45  ;;  %v2841_v3 = vpack.c.bf16 %v489_v49, %v480_v47 }
  0xe2   : > { %3233 = vst [vmem:[#allocation28_spill] sm:$0xff] %v2832_v48  ;;  %v508_v61 = vld [vmem:[#allocation10 + $0x230] sm:$0xff]  ;;  %v2843_v5 = vpack.c.bf16 %v506_v58, %v497_v56  ;;  %v505_v15 = vld [vmem:[#allocation10 + $0x218] sm:$0xff]  ;;  %v498_v21 = vld [vmem:[#allocation10 + $0x1e0] sm:$0xff] }
  0xe3   : > { %3234 = vst [vmem:[#allocation29_spill] sm:$0xff] %v2841_v3  ;;  %v496_v6 = vld [vmem:[#allocation10 + $0x1d0] sm:$0xff]  ;;  %v2846_v23 = vpack.c.bf16 %v508_v61, %v499_v59  ;;  %v507_v28 = vld [vmem:[#allocation10 + $0x228] sm:$0xff]  ;;  %v517_v32 = vld [vmem:[#allocation10 + $0x278] sm:$0xff] }
  0xe4   : > { %1743 = vmatpush1.bf16.msra.mxu0 %v2794_v50  ;;  %1775 = vmatpush1.bf16.msra.mxu1 %v2798_v54  ;;  %v515_v29 = vld [vmem:[#allocation10 + $0x268] sm:$0xff]  ;;  %v524_v30 = vld [vmem:[#allocation10 + $0x2b0] sm:$0xff]  ;;  %v526_v33 = vld [vmem:[#allocation10 + $0x2c0] sm:$0xff]  ;;  %v2849_v45 = vpack.c.bf16 %v505_v15, %v496_v6  ;;  %v2853_v46 = vpack.c.bf16 %v507_v28, %v498_v21 }
  0xe5   : > { %1777 = vmatprep.subr.bf16.mxu0 %v2800_v55  ;;  %1809 = vmatprep.subr.bf16.mxu1 %v2803_v60  ;;  %3235 = vst [vmem:[#allocation30_spill] sm:$0xff] %v2846_v23  ;;  %v2855_v47 = vpack.c.bf16 %v524_v30, %v515_v29  ;;  %v514_v49 = vld [vmem:[#allocation10 + $0x260] sm:$0xff]  ;;  %v523_v56 = vld [vmem:[#allocation10 + $0x2a8] sm:$0xff]  ;;  %v516_v58 = vld [vmem:[#allocation10 + $0x270] sm:$0xff]  ;;  %v2858_v59 = vpack.c.bf16 %v526_v33, %v517_v32 }
  0xe6   : > { %3236 = vst [vmem:[#allocation31_spill] sm:$0xff] %v2853_v46  ;;  %v525_v61 = vld [vmem:[#allocation10 + $0x2b8] sm:$0xff]  ;;  %v535_v6 = vld [vmem:[#allocation10 + $0x308] sm:$0xff]  ;;  %v544_v15 = vld [vmem:[#allocation10 + $0x350] sm:$0xff] }
  0xe7   : > { %648 = vmatmul.mubr.f32.vlgmr.msra.gmra.mrb[0].mxu0 %v2807_v10  ;;  %719 = vmatmul.mubr.f32.vlgmr.msra.gmra.mrb[0].mxu1 %v2807_v10  ;;  %3237 = vst [vmem:[#allocation32_spill] sm:$0xff] %v2858_v59  ;;  %v2865_v21 = vpack.c.bf16 %v525_v61, %v516_v58  ;;  %v532_v29 = vld [vmem:[#allocation10 + $0x2f0] sm:$0xff]  ;;  %v541_v30 = vld [vmem:[#allocation10 + $0x338] sm:$0xff]  ;;  %v534_v32 = vld [vmem:[#allocation10 + $0x300] sm:$0xff]  ;;  %v2870_v33 = vpack.c.bf16 %v544_v15, %v535_v6 }
  0xe8   : > { %1779 = vmatpush1.bf16.msra.mxu0 %v2809_v11  ;;  %1811 = vmatpush1.bf16.msra.mxu1 %v2813_v12  ;;  %v550_v58 = vld [vmem:[#allocation10 + $0x380] sm:$0xff]  ;;  %v559_v61 = vld [vmem:[#allocation10 + $0x3c8] sm:$0xff]  ;;  %v552_v6 = vld [vmem:[#allocation10 + $0x390] sm:$0xff] }
  0xe9   : > { %1781 = vmatprep.subr.bf16.mxu0 %v2815_v14  ;;  %1813 = vmatprep.subr.bf16.mxu1 %v2818_v24  ;;  %3238 = vst [vmem:[#allocation33_spill] sm:$0xff] %v2865_v21  ;;  %3239 = vst [vmem:[#allocation34_spill] sm:$0xff] %v2870_v33  ;;  %v560_v24 = vld [vmem:[#allocation10 + $0x3d0] sm:$0xff]  ;;  %v569_v12 = vld [vmem:[#allocation10 + $0x418] sm:$0xff] }
  0xea   : > { %789 = vmatprep.mubr.f32.mxu0 %v3186_v0  ;;  %860 = vmatprep.mubr.f32.mxu1 %v3186_v0  ;;  %v533_v0 = vld [vmem:[#allocation10 + $0x2f8] sm:$0xff]  ;;  %v578_v60 = vld [vmem:[#allocation10 + $0x460] sm:$0xff] }
  0xec   : > { %1783 = vmatpush1.bf16.msra.mxu0 %v2823_v38  ;;  %1815 = vmatpush1.bf16.msra.mxu1 %v2827_v41  ;;  %v551_v41 = vld [vmem:[#allocation10 + $0x388] sm:$0xff] }
  0xed   : > { %1785 = vmatprep.subr.bf16.mxu0 %v2829_v42  ;;  %1817 = vmatprep.subr.bf16.mxu1 %v2832_v48  ;;  %v542_v48 = vld [vmem:[#allocation10 + $0x340] sm:$0xff] }
  0xee   : > { %v2867_v28 = vpack.c.bf16 %v542_v48, %v533_v0  ;;  %v2879_v48 = vpack.c.bf16 %v560_v24, %v551_v41  ;;  %v2891_v41 = vpack.c.bf16 %v578_v60, %v569_v12  ;;  %v446_v60 = vld [vmem:[#allocation10 + $0x40] sm:$0xff]  ;;  %v455_v12 = vld [vmem:[#allocation10 + $0x88] sm:$0xff] }
  0xf0   : > { %1787 = vmatpush1.bf16.msra.mxu0 %v2837_v62  ;;  %1819 = vmatpush1.bf16.msra.mxu1 %v2841_v3  ;;  %v2861_v3 = vpack.c.bf16 %v523_v56, %v514_v49  ;;  %v553_v49 = vld [vmem:[#allocation10 + $0x398] sm:$0xff]  ;;  %v562_v56 = vld [vmem:[#allocation10 + $0x3e0] sm:$0xff] }
  0xf1   : > { %1789 = vmatprep.subr.bf16.mxu0 %v2843_v5  ;;  %1821 = vmatprep.subr.bf16.mxu1 %v2846_v23  ;;  %v543_v23 = vld [vmem:[#allocation10 + $0x348] sm:$0xff]  ;;  %v2882_v15 = vpack.c.bf16 %v562_v56, %v553_v49  ;;  %v570_v56 = vld [vmem:[#allocation10 + $0x420] sm:$0xff] }
  0xf2   : > { %v2877_v0 = vpack.c.bf16 %v543_v23, %v534_v32  ;;  %v568_v23 = vld [vmem:[#allocation10 + $0x410] sm:$0xff]  ;;  %v577_v32 = vld [vmem:[#allocation10 + $0x458] sm:$0xff] }
  0xf4   : > { %1791 = vmatpush1.bf16.msra.mxu0 %v2849_v45  ;;  %1823 = vmatpush1.bf16.msra.mxu1 %v2853_v46  ;;  %v2873_v46 = vpack.c.bf16 %v541_v30, %v532_v29  ;;  %v571_v29 = vld [vmem:[#allocation10 + $0x428] sm:$0xff]  ;;  %v580_v30 = vld [vmem:[#allocation10 + $0x470] sm:$0xff] }
  0xf5   : > { %1793 = vmatprep.subr.bf16.mxu0 %v2855_v47  ;;  %1825 = vmatprep.subr.bf16.mxu1 %v2858_v59  ;;  %v561_v59 = vld [vmem:[#allocation10 + $0x3d8] sm:$0xff]  ;;  %v2894_v49 = vpack.c.bf16 %v580_v30, %v571_v29  ;;  %v464_v29 = vld [vmem:[#allocation10 + $0xd0] sm:$0xff] }
  0xf6   : > { %v2889_v24 = vpack.c.bf16 %v561_v59, %v552_v6  ;;  %v2401_v6 = vmov 0.0|0.0   ;;  %v473_v30 = vld [vmem:[#allocation10 + $0x118] sm:$0xff] }
  0xf8   : > { %1795 = vmatpush1.bf16.msra.mxu0 %v2861_v3  ;;  %1827 = vmatpush1.bf16.msra.mxu1 %v2865_v21  ;;  %v2885_v21 = vpack.c.bf16 %v559_v61, %v550_v58  ;;  %v2897_v58 = vpack.c.bf16 %v577_v32, %v568_v23  ;;  %v2905_v61 = vpack.c.bf16 %v455_v12, %v446_v60  ;;  %v482_v23 = vld [vmem:[#allocation10 + $0x160] sm:$0xff]  ;;  %v491_v32 = vld [vmem:[#allocation10 + $0x1a8] sm:$0xff]  ;;  %v509_v60 = vld [vmem:[#allocation10 + $0x238] sm:$0xff] }
  0xf9   : > { %1797 = vmatprep.subr.bf16.mxu0 %v2867_v28  ;;  %1829 = vmatprep.subr.bf16.mxu1 %v2870_v33  ;;  %v579_v33 = vld [vmem:[#allocation10 + $0x468] sm:$0xff]  ;;  %v518_v12 = vld [vmem:[#allocation10 + $0x280] sm:$0xff] }
  0xfa   : > { %v2901_v59 = vpack.c.bf16 %v579_v33, %v570_v56  ;;  %v2913_v33 = vpack.c.bf16 %v473_v30, %v464_v29  ;;  %v3240_v56 = vmov 0.0   ;;  %v527_v29 = vld [vmem:[#allocation10 + $0x2c8] sm:$0xff]  ;;  %v545_v30 = vld [vmem:[#allocation10 + $0x358] sm:$0xff] }
  0xfc   : > { %1799 = vmatpush1.bf16.msra.mxu0 %v2873_v46  ;;  %1831 = vmatpush1.bf16.msra.mxu1 %v2877_v0 }
  0xfd   : > { %1801 = vmatprep.subr.bf16.mxu0 %v2879_v48  ;;  %1833 = vmatprep.subr.bf16.mxu1 %v2882_v15 }
 0x100   : > { %1803 = vmatpush1.bf16.msra.mxu0 %v2885_v21  ;;  %1835 = vmatpush1.bf16.msra.mxu1 %v2889_v24 }
 0x101   : > { %1805 = vmatprep.subr.bf16.mxu0 %v2891_v41  ;;  %1837 = vmatprep.subr.bf16.mxu1 %v2894_v49 }
 0x104   : > { %1807 = vmatpush1.bf16.msra.mxu0 %v2897_v58  ;;  %1839 = vmatpush1.bf16.msra.mxu1 %v2901_v59 }
 0x105   : > { %1840 = vmatprep.subr.bf16.mxu0 %v2401_v6  ;;  %1865 = vmatprep.subr.bf16.mxu1 %v2707_v4  ;;  %v2922_v4 = vpack.c.bf16 %v491_v32, %v482_v23  ;;  %v563_v23 = vld [vmem:[#allocation10 + $0x3e8] sm:$0xff]  ;;  %v581_v32 = vld [vmem:[#allocation10 + $0x478] sm:$0xff] }
 0x107   : > { %790 = vmatmul.mubr.f32.vlgmr.msra.gmra.mrb[2].mxu0 %v2807_v10  ;;  %861 = vmatmul.mubr.f32.vlgmr.msra.gmra.mrb[2].mxu1 %v2807_v10 }
 0x108   : > { %1842 = vmatpush3.bf16.msra.mxu0 %v2905_v61  ;;  %1867 = vmatpush1.bf16.msra.mxu1 %v2711_v9  ;;  %v500_v9 = vld [vmem:[#allocation10 + $0x1f0] sm:$0xff] }
 0x109   : > { %1843 = vmatprep.subr.bf16.mxu0 %v2401_v6  ;;  %1869 = vmatprep.subr.bf16.mxu1 %v2718_v17  ;;  %v2928_v17 = vpack.c.bf16 %v509_v60, %v500_v9 }
 0x10a   : > { %1674 = vmatprep.mubr.msk.f32.mxu0 %vm2402_vm0, %v3240_v56  ;;  %1002 = vmatprep.mubr.f32.mxu1 %v3240_v56 }
 0x10c   : > { %1845 = vmatpush3.bf16.msra.mxu0 %v2913_v33  ;;  %1871 = vmatpush1.bf16.msra.mxu1 %v2723_v22  ;;  %v2934_v22 = vpack.c.bf16 %v527_v29, %v518_v12 }
 0x10d   : > { %1846 = vmatprep.subr.bf16.mxu0 %v2401_v6  ;;  %1873 = vmatprep.subr.bf16.mxu1 %v2729_v27  ;;  %v536_v27 = vld [vmem:[#allocation10 + $0x310] sm:$0xff] }
 0x110   : > { %1848 = vmatpush3.bf16.msra.mxu0 %v2922_v4  ;;  %1875 = vmatpush1.bf16.msra.mxu1 %v2734_v35  ;;  %v2940_v35 = vpack.c.bf16 %v545_v30, %v536_v27 }
 0x111   : > { %1849 = vmatprep.subr.bf16.mxu0 %v2401_v6  ;;  %1877 = vmatprep.subr.bf16.mxu1 %v2740_v40  ;;  %v554_v40 = vld [vmem:[#allocation10 + $0x3a0] sm:$0xff] }
 0x114   : > { %1851 = vmatpush3.bf16.msra.mxu0 %v2928_v17  ;;  %1879 = vmatpush1.bf16.msra.mxu1 %v2746_v51  ;;  %v2946_v51 = vpack.c.bf16 %v563_v23, %v554_v40 }
 0x115   : > { %1852 = vmatprep.subr.bf16.mxu0 %v2401_v6  ;;  %1881 = vmatprep.subr.bf16.mxu1 %v2752_v53  ;;  %v572_v53 = vld [vmem:[#allocation10 + $0x430] sm:$0xff] }
 0x118   : > { %1854 = vmatpush3.bf16.msra.mxu0 %v2934_v22  ;;  %1883 = vmatpush1.bf16.msra.mxu1 %v2758_v63  ;;  %v2952_v63 = vpack.c.bf16 %v581_v32, %v572_v53 }
 0x119   : > { %1855 = vmatprep.subr.bf16.mxu0 %v2401_v6  ;;  %1885 = vmatprep.subr.bf16.mxu1 %v2764_v2  ;;  %v2961_v2 = vld [vmem:[%s2693_s15] sm:$0xff] }
 0x11c   : > { %1857 = vmatpush3.bf16.msra.mxu0 %v2940_v35  ;;  %1887 = vmatpush1.bf16.msra.mxu1 %v2770_v16  ;;  %v1292_v16 = vld [vmem:[%s2678_s20] sm:$0xff] }
 0x11d   : > { %1858 = vmatprep.subr.bf16.mxu0 %v2401_v6  ;;  %1889 = vmatprep.subr.bf16.mxu1 %v2776_v20  ;;  %v1294_v20 = vld [vmem:[%s2678_s20 + $0x10] sm:$0xff] }
 0x120   : > { %1860 = vmatpush3.bf16.msra.mxu0 %v2946_v51  ;;  %1891 = vmatpush1.bf16.msra.mxu1 %v2782_v34  ;;  %v1295_v34 = vld [vmem:[%s2678_s20 + $0x18] sm:$0xff] }
 0x121   : > { %1861 = vmatprep.subr.bf16.mxu0 %v2401_v6  ;;  %1893 = vmatprep.subr.bf16.mxu1 %v2788_v37 }
 0x124   : > { %1863 = vmatpush3.bf16.msra.mxu0 %v2952_v63  ;;  %1895 = vmatpush1.bf16.msra.mxu1 %v2794_v50 }
 0x125   : > { %1897 = vmatprep.subr.bf16.mxu0 %v2709_v8  ;;  %1929 = vmatprep.subr.bf16.mxu1 %v2800_v55  ;;  %v3241_v8 = vld [vmem:[#allocation24_spill] sm:$0xff] }
 0x127   : > { %1675 = vmatmul.mubr.f32.vlgmr.msra.gmra.mrb[4].mxu0 %v2807_v10  ;;  %1003 = vmatmul.mubr.f32.vlgmr.msra.gmra.mrb[4].mxu1 %v2961_v2 }
 0x128   : > { %1899 = vmatpush1.bf16.msra.mxu0 %v2714_v13  ;;  %1931 = vmatpush1.bf16.msra.mxu1 %v2809_v11  ;;  %v3242_v13 = vld [vmem:[#allocation25_spill] sm:$0xff] }
 0x129   : > { %1901 = vmatprep.subr.bf16.mxu0 %v2720_v18  ;;  %1933 = vmatprep.subr.bf16.mxu1 %v2815_v14  ;;  %v3243_v18 = vld [vmem:[#allocation26_spill] sm:$0xff]  ;;  %v1296_v11 = vld [vmem:[%s2678_s20 + $0x20] sm:$0xff] }
 0x12a   : > { %1073 = vmatprep.mubr.f32.mxu0 %v3240_v56  ;;  %1144 = vmatprep.mubr.f32.mxu1 %v3240_v56  ;;  %v1297_v14 = vld [vmem:[%s2678_s20 + $0x28] sm:$0xff] }
 0x12c   : > { %1903 = vmatpush1.bf16.msra.mxu0 %v2727_v26  ;;  %1935 = vmatpush1.bf16.msra.mxu1 %v2823_v38  ;;  %v3244_v26 = vld [vmem:[#allocation27_spill] sm:$0xff] }
 0x12d   : > { %1905 = vmatprep.subr.bf16.mxu0 %v2731_v31  ;;  %1937 = vmatprep.subr.bf16.mxu1 %v2829_v42  ;;  %v3245_v31 = vld [vmem:[#allocation28_spill] sm:$0xff]  ;;  %v1298_v38 = vld [vmem:[%s2678_s20 + $0x30] sm:$0xff] }
 0x130   : > { %1907 = vmatpush1.bf16.msra.mxu0 %v2738_v39  ;;  %1939 = vmatpush1.bf16.msra.mxu1 %v2837_v62  ;;  %v3246_v39 = vld [vmem:[#allocation29_spill] sm:$0xff]  ;;  %v1299_v62 = vld [vmem:[%s2678_s20 + $0x38] sm:$0xff] }
 0x131   : > { %1909 = vmatprep.subr.bf16.mxu0 %v2743_v44  ;;  %1941 = vmatprep.subr.bf16.mxu1 %v2843_v5  ;;  %v3247_v44 = vld [vmem:[#allocation30_spill] sm:$0xff] }
 0x134   : > { %1911 = vmatpush1.bf16.msra.mxu0 %v2750_v52  ;;  %1943 = vmatpush1.bf16.msra.mxu1 %v2849_v45  ;;  %v3248_v52 = vld [vmem:[#allocation31_spill] sm:$0xff] }
 0x135   : > { %1913 = vmatprep.subr.bf16.mxu0 %v2755_v57  ;;  %1945 = vmatprep.subr.bf16.mxu1 %v2855_v47  ;;  %v3249_v57 = vld [vmem:[#allocation32_spill] sm:$0xff] }
 0x138   : > { %1915 = vmatpush1.bf16.msra.mxu0 %v2762_v1  ;;  %1947 = vmatpush1.bf16.msra.mxu1 %v2861_v3  ;;  %v3250_v1 = vld [vmem:[#allocation33_spill] sm:$0xff] }
 0x139   : > { %1917 = vmatprep.subr.bf16.mxu0 %v2767_v7  ;;  %1949 = vmatprep.subr.bf16.mxu1 %v2867_v28  ;;  %v3251_v7 = vld [vmem:[#allocation34_spill] sm:$0xff] }
 0x13c   : > { %1919 = vmatpush1.bf16.msra.mxu0 %v2774_v19  ;;  %1951 = vmatpush1.bf16.msra.mxu1 %v2873_v46  ;;  %v1293_v19 = vld [vmem:[%s2678_s20 + $0x8] sm:$0xff] }
 0x13d   : > { %1921 = vmatprep.subr.bf16.mxu0 %v2779_v25  ;;  %1953 = vmatprep.subr.bf16.mxu1 %v2879_v48  ;;  %v1319_v48 = vld [vmem:[%s2686_s28] sm:$0xff] }
 0x140   : > { %1923 = vmatpush1.bf16.msra.mxu0 %v2786_v36  ;;  %1955 = vmatpush1.bf16.msra.mxu1 %v2885_v21 }
 0x141   : > { %1925 = vmatprep.subr.bf16.mxu0 %v2791_v43  ;;  %1957 = vmatprep.subr.bf16.mxu1 %v2891_v41 }
 0x144   : > { %1927 = vmatpush1.bf16.msra.mxu0 %v2798_v54  ;;  %1959 = vmatpush1.bf16.msra.mxu1 %v2897_v58 }
 0x145   : > { %1961 = vmatprep.subr.bf16.mxu0 %v3241_v8  ;;  %1992 = vmatprep.subr.bf16.mxu1 %v2401_v6 }
 0x147   : > { %1074 = vmatmul.mubr.f32.vlgmr.msra.gmra.mrb[6].mxu0 %v2961_v2  ;;  %1145 = vmatmul.mubr.f32.vlgmr.msra.gmra.mrb[6].mxu1 %v2961_v2 }
 0x148   : > { %1963 = vmatpush1.bf16.msra.mxu0 %v3242_v13  ;;  %1994 = vmatpush3.bf16.msra.mxu1 %v2905_v61 }
 0x149   : > { %1965 = vmatprep.subr.bf16.mxu0 %v3243_v18  ;;  %1995 = vmatprep.subr.bf16.mxu1 %v2401_v6 }
 0x14a   : > { %1215 = vmatprep.mubr.f32.mxu0 %v3240_v56  ;;  %1709 = vmatprep.mubr.msk.f32.mxu1 %vm2402_vm0, %v3240_v56 }
 0x14c   : > { %1967 = vmatpush1.bf16.msra.mxu0 %v3244_v26  ;;  %1997 = vmatpush3.bf16.msra.mxu1 %v2913_v33 }
 0x14d   : > { %1969 = vmatprep.subr.bf16.mxu0 %v3245_v31  ;;  %1998 = vmatprep.subr.bf16.mxu1 %v2401_v6 }
 0x150   : > { %1971 = vmatpush1.bf16.msra.mxu0 %v3246_v39  ;;  %2000 = vmatpush3.bf16.msra.mxu1 %v2922_v4 }
 0x151   : > { %1973 = vmatprep.subr.bf16.mxu0 %v3247_v44  ;;  %2001 = vmatprep.subr.bf16.mxu1 %v2401_v6 }
 0x154   : > { %1975 = vmatpush1.bf16.msra.mxu0 %v3248_v52  ;;  %2003 = vmatpush3.bf16.msra.mxu1 %v2928_v17 }
 0x155   : > { %1977 = vmatprep.subr.bf16.mxu0 %v3249_v57  ;;  %2004 = vmatprep.subr.bf16.mxu1 %v2401_v6 }
 0x158   : > { %1979 = vmatpush1.bf16.msra.mxu0 %v3250_v1  ;;  %2006 = vmatpush3.bf16.msra.mxu1 %v2934_v22 }
 0x159   : > { %1981 = vmatprep.subr.bf16.mxu0 %v3251_v7  ;;  %2007 = vmatprep.subr.bf16.mxu1 %v2401_v6 }
 0x15c   : > { %1983 = vmatpush1.bf16.msra.mxu0 %v2877_v0  ;;  %2009 = vmatpush3.bf16.msra.mxu1 %v2940_v35  ;;  %v1300_v0 = vld [vmem:[%s2678_s20 + $0x40] sm:$0xff]  ;;  %s2271_s20 = scalar_lea.vmem %s2270_s8, 2304 }
 0x15d   : > { %1985 = vmatprep.subr.bf16.mxu0 %v2882_v15  ;;  %2010 = vmatprep.subr.bf16.mxu1 %v2401_v6  ;;  %p2273_p12 = scmp.lt.s32.totalorder %s2271_s20, %s2265_s30 }
 0x15f   : > { %p2274_p6 = por %p2273_p12, %p2272_p2 }
 0x160   : > { %1987 = vmatpush1.bf16.msra.mxu0 %v2889_v24  ;;  %2012 = vmatpush3.bf16.msra.mxu1 %v2946_v51  ;;  %v1320_v24 = vld [vmem:[%s2686_s28 + $0x8] sm:$0xff] }
 0x161   : > { %1989 = vmatprep.subr.bf16.mxu0 %v2894_v49  ;;  %2013 = vmatprep.subr.bf16.mxu1 %v2401_v6  ;;  %p2275_p8 = pnand %p2274_p6, %p2268_p11 }
 0x164   : > { %1991 = vmatpush1.bf16.msra.mxu0 %v2901_v59  ;;  %2015 = vmatpush3.bf16.msra.mxu1 %v2952_v63 }
 0x167   : > { %1216 = vmatmul.mubr.f32.vlgmr.msra.gmra.mrb[8].mxu0 %v2961_v2  ;;  %1710 = vmatmul.mubr.f32.vlgmr.msra.gmra.mrb[8].mxu1 %v2961_v2 }
 0x1ba   : > { %v649_v25 = vpop.f32.mrb[0].mxu0  ;;  %v720_v43 = vpop.f32.mrb[0].mxu1 }
 0x1bb   : > { %v1301_v36 = vmul.f32 %v1292_v16, %v649_v25  ;;  %v651_v37 = vpop.f32.mrb[1].mxu0  ;;  %v1303_v54 = vmul.f32 %v1294_v20, %v720_v43  ;;  %v722_v55 = vpop.f32.mrb[1].mxu1 }
 0x1bc   : > { %v1302_v50 = vmul.f32 %v1293_v19, %v651_v37  ;;  %v1304_v10 = vmul.f32 %v1295_v34, %v722_v55 }
 0x1bd   : > { %1310 = vst [vmem:[%s3042_s27] sm:$0xff] %v1301_v36  ;;  %1312 = vst [vmem:[%s3042_s27 + $0x10] sm:$0xff] %v1303_v54 }
 0x1be   : > { %1311 = vst [vmem:[%s3042_s27 + $0x8] sm:$0xff] %v1302_v50  ;;  %1313 = vst [vmem:[%s3042_s27 + $0x18] sm:$0xff] %v1304_v10 }
 0x1da   : > { %v791_v42 = vpop.f32.mrb[2].mxu0  ;;  %v862_v45 = vpop.f32.mrb[2].mxu1 }
 0x1db   : > { %v1305_v3 = vmul.f32 %v1296_v11, %v791_v42  ;;  %v793_v5 = vpop.f32.mrb[3].mxu0  ;;  %v1307_v47 = vmul.f32 %v1298_v38, %v862_v45  ;;  %v864_v21 = vpop.f32.mrb[3].mxu1 }
 0x1dc   : > { %v1306_v46 = vmul.f32 %v1297_v14, %v793_v5  ;;  %v1308_v28 = vmul.f32 %v1299_v62, %v864_v21 }
 0x1dd   : > { %1314 = vst [vmem:[%s3042_s27 + $0x20] sm:$0xff] %v1305_v3  ;;  %1316 = vst [vmem:[%s3042_s27 + $0x30] sm:$0xff] %v1307_v47 }
 0x1de   : > { %1315 = vst [vmem:[%s3042_s27 + $0x28] sm:$0xff] %v1306_v46  ;;  %1317 = vst [vmem:[%s3042_s27 + $0x38] sm:$0xff] %v1308_v28 }
 0x1fa   : > { %v933_v15 = vpop.f32.mrb[4].mxu0  ;;  %v1004_v58 = vpop.f32.mrb[4].mxu1 }
 0x1fb   : > { %v1309_v41 = vmul.f32 %v1300_v0, %v933_v15  ;;  %v1676_v49 = vpop.f32.mrb[5].mxu0  ;;  %v1328_v59 = vmul.f32 %v1319_v48, %v1004_v58  ;;  %v1006_v61 = vpop.f32.mrb[5].mxu1 }
 0x1fc   : > { %v1329_v6 = vmul.f32 %v1320_v24, %v1006_v61 }
 0x1fd   : > { %1318 = vst [vmem:[%s3042_s27 + $0x40] sm:$0xff] %v1309_v41  ;;  %1337 = vst [vmem:[%s3072_s4] sm:$0xff] %v1328_v59 }
 0x1fe   : > { %2278 = shalt.err (!%p2275_p8)
}
 0x1ff   : > { %s2279_s19 = scalar_lea.hbm %s3066_s9, 1152  ;;  %s2283_s17 = scalar_lea.hbm %s3172_s5, 2304 }
 0x200   : > { %p2280_p5 = scmp.ne.s32.totalorder %s3066_s9, %s2279_s19  ;;  %p2284_p3 = scmp.lt.u32.totalorder %s3066_s9, %s3172_s5 }
 0x201   : > { %p2285_p13 = scmp.lt.u32.totalorder %s2283_s17, %s2279_s19  ;;  %p2287_p10 = scmp.lt.u32.totalorder %s2279_s19, %s3066_s9 }
 0x202   : > { %p2281_p9 = pnand %p2280_p5, %p3252_p7 }
 0x203   : > { %p2286_p1 = por %p2285_p13, %p2284_p3 }
 0x204   : > { %p2282_p0 = pneg %p2281_p9 }
 0x205   : > { %p2288_p4 = por %p2287_p10, %p2286_p1 }
 0x207   : > { %p2289_p11 = pnand %p2288_p4, %p2282_p0 }
 0x209   : > { %2292 = shalt.err (!%p2289_p11)
}
 0x20a   : > { %2031 = dma.vmem_to_hbm [thread:$0]  (%p3252_p7), %s3068_s18, 1152, %s3066_s9, %s1347_s0   ;;  %1338 = vst [vmem:[%s3072_s4 + $0x8] sm:$0xff] %v1329_v6  ;;  %v1321_v33 = vld [vmem:[%s2686_s28 + $0x10] sm:$0xff]  ;;  %v1322_v56 = vld [vmem:[%s2686_s28 + $0x18] sm:$0xff]  ;;  %v1323_v4 = vld [vmem:[%s2686_s28 + $0x20] sm:$0xff] }
 0x20b   : > { %v1324_v60 = vld [vmem:[%s2686_s28 + $0x28] sm:$0xff]  ;;  %v1325_v40 = vld [vmem:[%s2686_s28 + $0x30] sm:$0xff]  ;;  %v1327_v23 = vld [vmem:[%s2686_s28 + $0x40] sm:$0xff]  ;;  %s1384_s13 = sshll.u32 %s3072_s4, 4  ;;  %s3115_s23 = scalar_lea.hbm %s3173_s6, %s1606_s29  ;;  %s3117_s13 = int_to_ptr.vmem [resolvable:$true] %s1384_s13 }
 0x20c   : > { %v1326_v51 = vld [vmem:[%s2686_s28 + $0x38] sm:$0xff]  ;;  %s1352_s28 = scalar_lea.sflag [#allocation13], %s2671_s11  ;;  %s2293_s1 = scalar_lea.vmem %s3117_s13, 1152 }
 0x20d   : > { %p2294_p2 = scmp.ne.s32.totalorder %s3117_s13, %s2293_s1  ;;  %s2404_s24 = smov [#allocation12]  }
 0x20e   : > { %s2297_s9 = sshll.u32 %s2404_s24, 4  ;;  %s2298_s9 = int_to_ptr.vmem [resolvable:$false] %s2297_s9 }
 0x20f   : > { %p2295_p12 = pnand %p2294_p2, %p3252_p7  ;;  %s2299_s0 = scalar_lea.vmem %s2298_s9, 2304 }
 0x210   : > { %p2300_p8 = scmp.lt.s32.totalorder %s3117_s13, %s2298_s9  ;;  %p2301_p5 = scmp.lt.s32.totalorder %s2299_s0, %s2293_s1 }
 0x211   : > { %p2296_p6 = pneg %p2295_p12 }
 0x212   : > { %p2302_p9 = por %p2301_p5, %p2300_p8 }
 0x214   : > { %p2303_p0 = pnand %p2302_p9, %p2296_p6 }
 0x21a   : > { %v1075_v9 = vpop.f32.mrb[6].mxu0  ;;  %v1146_v29 = vpop.f32.mrb[6].mxu1 }
 0x21b   : > { %v1330_v17 = vmul.f32 %v1321_v33, %v1075_v9  ;;  %v1077_v12 = vpop.f32.mrb[7].mxu0  ;;  %v1332_v27 = vmul.f32 %v1323_v4, %v1146_v29  ;;  %v1148_v30 = vpop.f32.mrb[7].mxu1 }
 0x21c   : > { %v1331_v22 = vmul.f32 %v1322_v56, %v1077_v12  ;;  %v1333_v35 = vmul.f32 %v1324_v60, %v1148_v30 }
 0x21d   : > { %1339 = vst [vmem:[%s3072_s4 + $0x10] sm:$0xff] %v1330_v17  ;;  %1341 = vst [vmem:[%s3072_s4 + $0x20] sm:$0xff] %v1332_v27 }
 0x21e   : > { %1340 = vst [vmem:[%s3072_s4 + $0x18] sm:$0xff] %v1331_v22  ;;  %1342 = vst [vmem:[%s3072_s4 + $0x28] sm:$0xff] %v1333_v35 }
 0x23a   : > { %v1217_v53 = vpop.f32.mrb[8].mxu0  ;;  %v1288_v63 = vpop.f32.mrb[8].mxu1 }
 0x23b   : > { %v1334_v32 = vmul.f32 %v1325_v40, %v1217_v53  ;;  %v1219_v2 = vpop.f32.mrb[9].mxu0  ;;  %v1336_v8 = vmul.f32 %v1327_v23, %v1288_v63  ;;  %v1711_v18 = vpop.f32.mrb[9].mxu1 }
 0x23c   : > { %v1335_v13 = vmul.f32 %v1326_v51, %v1219_v2 }
 0x23d   : > { %1343 = vst [vmem:[%s3072_s4 + $0x30] sm:$0xff] %v1334_v32  ;;  %1345 = vst [vmem:[%s3072_s4 + $0x40] sm:$0xff] %v1336_v8 }
 0x23e   : > { %1344 = vst [vmem:[%s3072_s4 + $0x38] sm:$0xff] %v1335_v13 }
 0x23f   : > { %2306 = shalt.err (!%p2303_p0)
}
 0x240   : > { %s2307_s11 = scalar_lea.hbm %s3115_s23, 1152  ;;  %s2311_s30 = scalar_lea.hbm %s3173_s6, 2304 }
 0x241   : > { %p2308_p3 = scmp.ne.s32.totalorder %s3115_s23, %s2307_s11  ;;  %p2312_p10 = scmp.lt.u32.totalorder %s3115_s23, %s3173_s6 }
 0x242   : > { %p2313_p4 = scmp.lt.u32.totalorder %s2311_s30, %s2307_s11  ;;  %p2315_p2 = scmp.lt.u32.totalorder %s2307_s11, %s3115_s23 }
 0x243   : > { %p2309_p13 = pnand %p2308_p3, %p3252_p7 }
 0x244   : > { %p2314_p11 = por %p2313_p4, %p2312_p10 }
 0x245   : > { %p2310_p1 = pneg %p2309_p13 }
 0x246   : > { %p2316_p12 = por %p2315_p2, %p2314_p11 }
 0x248   : > { %p2317_p6 = pnand %p2316_p12, %p2310_p1 }
 0x24a   : > { %2320 = shalt.err (!%p2317_p6)
}
 0x24b   : > { %2032 = dma.vmem_to_hbm [thread:$0]  (%p3252_p7), %s3117_s13, 1152, %s3115_s23, %s1352_s28  }
 0x24c PF: > { %s3253_s20 = sld [smem:[#allocation21_spill]]  ;;  %s1396_s19 = sand.u32 1, %s2371_s21  }
 0x24d   : > { %p3255_p5 = scmp.ge.s32.totalorder %s2391_s26, 2  ;;  %s1397_s7 = scalar_lea.sflag [#allocation4], %s1396_s19 }
 0x252   : > { %p3254_p8 = scmp.ne.s32.totalorder %s3253_s20, 0 }
 0x254   : > { %p2053_p9 = pnand %p3255_p5, %p3254_p8 }
 0x256   : > { %2362 = dma.done.wait (!%p2053_p9), %s1397_s7, 1152  }
 0x257   : > { %2364 = vsyncadd (!%p2053_p9), %s1397_s7, 4294966144  ;;  %s1406_s16 = scalar_lea.sflag [#allocation13], %s1396_s19 }
 0x258   : > { %2366 = dma.done.wait (!%p2053_p9), %s1406_s16, 1152  }
 0x259   : > { %2368 = vsyncadd (!%p2053_p9), %s1406_s16, 4294966144  ;;  %s32_s26 = sadd.s32 1, %s2391_s26   ;;  %s3256_s14 = sld [smem:[#allocation20_spill]] }
 0x25a   : > { %p29_p0 = scmp.ge.s32.totalorder %s32_s26, 4   ;;  %s3257_s23 = sld [smem:[#allocation23_spill]] }
 0x25b   : > { %s3258_s17 = sld [smem:[#allocation22_spill]]  ;;  %s3259_s21 = smov %s2375_s22 }
 0x25c   : > { %s3261_s24 = smov %s2387_s25  ;;  %31 = sbr.rel (!%p29_p0) target bundleno = 16 (0x10), region = 143 }
 0x25f   : > { %s3260_s22 = smov %s3256_s14 }
 0x261   : > { %s3262_s25 = smov %s3258_s17 }
 0x263   :  { %1411 = vsyncpa [#allocation3], 1 }
 0x264   :  { %1413 = vsyncpa [#allocation3 + $0x1], 1 }
 0x265   :  { %1414 = vsyncpa [#allocation6], 1 }
 0x266   :  { %1416 = vsyncpa [#allocation6 + $0x1], 1 }
 0x267   :  { %1417 = vsyncpa [#allocation9], 1 }
 0x268   :  { %1419 = vsyncpa [#allocation9 + $0x1], 1 }
 0x269   :  { %1420 = vsyncpa [#allocation4], 1 }
 0x26a   :  { %1422 = vsyncpa [#allocation4 + $0x1], 1 }
 0x26b   :  { %1423 = vsyncpa [#allocation13], 1 }
 0x26c   :  { %1425 = vsyncpa [#allocation13 + $0x1], 1 }

</bundles_post_ra>
